<compile_context>
chip_gen: v7x
topology: tpu7x:2x2x1
jax: 0.10.0
libtpu: 0.0.40
codegen_flags: <defaults>
</compile_context>

<pallas_src>
from functools import partial

import numpy as np
import jax
import jax.numpy as jnp
from jax.experimental import pallas as pl
from jax.experimental.pallas import tpu as pltpu


# ----------------------------------------------------------------------------
# Kernel: LayerNorm over the last dim of a (row_tile, F) slab
# ----------------------------------------------------------------------------
def layernorm_kernel(x_ref, a_ref, b_ref, o_ref, *, eps, feat):
    x = x_ref[...].astype(jnp.float32)                         # (TR, F) f32
    inv_n = 1.0 / float(feat)
    inv_nm1 = 1.0 / float(max(feat - 1, 1))                    # unbiased (N-1)

    mean = jnp.sum(x, axis=-1, keepdims=True) * inv_n          # (TR, 1)
    d = x - mean
    var = jnp.sum(d * d, axis=-1, keepdims=True) * inv_nm1     # unbiased var
    std = jnp.sqrt(var)
    inv = pl.reciprocal(std + eps, approx=False)               # exact 1/(std+eps)

    a = a_ref[...].astype(jnp.float32)
    b = b_ref[...].astype(jnp.float32)
    # a_2 * (x - mean) / (std + eps) + b_2, cast back to the output dtype
    o_ref[...] = (a * (d * inv) + b).astype(o_ref.dtype)


# ----------------------------------------------------------------------------
# Wrapper
# ----------------------------------------------------------------------------
def layer_norm_pallas(x, a2, b2, eps=1e-6):
    """LayerNorm over the last dim of x (any leading shape, native dtype)."""
    orig_shape = x.shape
    feat = int(orig_shape[-1])
    rows = 1
    for s in orig_shape[:-1]:
        rows *= int(s)

    x2 = x.reshape(rows, feat)
    a2r = a2.reshape(1, feat)
    b2r = b2.reshape(1, feat)

    # ---- Row-tile sizing (bytes-targeted, multiple of 8) --------------------
    # Target ~2 MiB of f32 compute footprint per block: big enough to amortize
    # the ~0.35 us per-step overhead, small enough that 2x in + 2x out blocks
    # plus in-kernel f32 temps fit the v5e 16 MiB / v6e-v7x 32 MiB default
    # scoped VMEM (and well under v7x's 64 MiB physical).
    target_bytes = 2 * 1024 * 1024
    tr = max(8, (target_bytes // (feat * 4) // 8) * 8)
    rows_ceil8 = ((rows + 7) // 8) * 8
    tr = min(tr, rows_ceil8)
    # v7x megacore: make sure there are >= 2 grid steps when there is enough
    # work, so the "parallel" axis can shard across both TensorCores.
    if rows > 8 and tr >= rows:
        tr = max(8, ((pl.cdiv(rows, 2) + 7) // 8) * 8)
    grid = pl.cdiv(rows, tr)

    out = pl.pallas_call(
        partial(layernorm_kernel, eps=float(eps), feat=feat),
        out_shape=jax.ShapeDtypeStruct((rows, feat), x.dtype),
        grid_spec=pltpu.PrefetchScalarGridSpec(
            num_scalar_prefetch=0,
            grid=(grid,),
            in_specs=[
                pl.BlockSpec((tr, feat), lambda i: (i, 0)),   # x row-tile
                pl.BlockSpec((1, feat), lambda i: (0, 0)),    # a_2 (resident)
                pl.BlockSpec((1, feat), lambda i: (0, 0)),    # b_2 (resident)
            ],
            out_specs=pl.BlockSpec((tr, feat), lambda i: (i, 0)),
        ),
        compiler_params=pltpu.CompilerParams(
            dimension_semantics=("parallel",)),                # megacore on v7x
    )(x2, a2r, b2r)

    return out.reshape(orig_shape)


# ----------------------------------------------------------------------------
# Pure-JAX reference (matches the PyTorch module exactly)
# ----------------------------------------------------------------------------
def layer_norm_ref(x, a2, b2, eps=1e-6):
    x = x.astype(jnp.float32)
    a2 = a2.astype(jnp.float32)
    b2 = b2.astype(jnp.float32)
    mean = jnp.mean(x, axis=-1, keepdims=True)
    std = jnp.std(x, axis=-1, keepdims=True, ddof=1)           # unbiased, like torch.Tensor.std
    return a2 * (x - mean) / (std + eps) + b2


# ----------------------------------------------------------------------------
# main
# ----------------------------------------------------------------------------
if __name__ == "__main__":
    key = jax.random.PRNGKey(0)

    # Primary (lane-dense) case: batch=2, seq=8, features=256, f32
    B, T, F = 2, 8, 256
    k1, k2, k3 = jax.random.split(key, 3)
    x = jax.random.normal(k1, (B, T, F), jnp.float32)
    a2 = jnp.ones((F,), jnp.float32) + 0.1 * jax.random.normal(k2, (F,), jnp.float32)
    b2 = 0.1 * jax.random.normal(k3, (F,), jnp.float32)

    out = jax.block_until_ready(layer_norm_pallas(x, a2, b2))
    ref = layer_norm_ref(x, a2, b2)
    np.testing.assert_allclose(np.asarray(out), np.asarray(ref),
                               rtol=1e-4, atol=1e-5, err_msg="layernorm F=256 f32")

    # bf16 case: native-dtype HBM blocks, f32 compute inside the kernel
    xb = jax.random.normal(jax.random.PRNGKey(2), (B, T, F), jnp.float32).astype(jnp.bfloat16)
    ob = jax.block_until_ready(layer_norm_pallas(xb, a2.astype(jnp.bfloat16),
                                                 b2.astype(jnp.bfloat16)))
    rb = layer_norm_ref(xb, a2.astype(jnp.bfloat16), b2.astype(jnp.bfloat16))
    np.testing.assert_allclose(np.asarray(ob, dtype=np.float32), np.asarray(rb),
                               rtol=2e-2, atol=2e-2, err_msg="layernorm F=256 bf16")

    # Unaligned case: small F (=32) and rows (=15) not a multiple of the tile
    x2 = jax.random.normal(jax.random.PRNGKey(1), (3, 5, 32), jnp.float32)
    a2b = jnp.ones((32,), jnp.float32)
    b2b = jnp.zeros((32,), jnp.float32)
    o2 = jax.block_until_ready(layer_norm_pallas(x2, a2b, b2b))
    r2 = layer_norm_ref(x2, a2b, b2b)
    np.testing.assert_allclose(np.asarray(o2), np.asarray(r2),
                               rtol=1e-4, atol=1e-5, err_msg="layernorm F=32")

    print("KERNEL_OK")
</pallas_src>

<mosaic_0001>
module attributes {stable_mosaic.version = 11 : i64} {
  func.func @layernorm_kernel(%arg0: i32, %arg1: memref<8x256xf32, #tpu.memory_space<vmem>>, %arg2: memref<1x256xf32, #tpu.memory_space<vmem>>, %arg3: memref<1x256xf32, #tpu.memory_space<vmem>>, %arg4: memref<8x256xf32, #tpu.memory_space<vmem>>) attributes {dimension_semantics = [#tpu.dimension_semantics<parallel>], iteration_bounds = array<i64: 2>, scalar_prefetch = 0 : i64, scratch_operands = 0 : i64, tpu.core_type = #tpu.core_type<tc>, window_params = [{transform_indices = @transform_0, window_bounds = array<i64: 8, 256>}, {pipeline_mode = #tpu.pipeline_mode<synchronous>, transform_indices = @transform_1, window_bounds = array<i64: 1, 256>}, {pipeline_mode = #tpu.pipeline_mode<synchronous>, transform_indices = @transform_2, window_bounds = array<i64: 1, 256>}, {transform_indices = @transform_3, window_bounds = array<i64: 8, 256>}]} {
    %c0 = arith.constant 0 : index
    %c0_0 = arith.constant 0 : index
    %0 = vector.load %arg1[%c0, %c0_0] : memref<8x256xf32, #tpu.memory_space<vmem>>, vector<8x256xf32>
    %cst = arith.constant dense<0.000000e+00> : vector<8xf32>
    %1 = vector.multi_reduction <add>, %0, %cst [1] : vector<8x256xf32> to vector<8xf32>
    %2 = vector.shape_cast %1 : vector<8xf32> to vector<8x1xf32>
    %cst_1 = arith.constant 3.906250e-03 : f32
    %3 = vector.broadcast %cst_1 : f32 to vector<8x1xf32>
    %4 = arith.mulf %2, %3 : vector<8x1xf32>
    %5 = vector.broadcast %4 : vector<8x1xf32> to vector<8x256xf32>
    %6 = arith.subf %0, %5 : vector<8x256xf32>
    %7 = arith.mulf %6, %6 : vector<8x256xf32>
    %cst_2 = arith.constant dense<0.000000e+00> : vector<8xf32>
    %8 = vector.multi_reduction <add>, %7, %cst_2 [1] : vector<8x256xf32> to vector<8xf32>
    %9 = vector.shape_cast %8 : vector<8xf32> to vector<8x1xf32>
    %cst_3 = arith.constant 0.00392156886 : f32
    %10 = vector.broadcast %cst_3 : f32 to vector<8x1xf32>
    %11 = arith.mulf %9, %10 : vector<8x1xf32>
    %12 = math.sqrt %11 : vector<8x1xf32>
    %cst_4 = arith.constant 9.99999997E-7 : f32
    %13 = vector.broadcast %cst_4 : f32 to vector<8x1xf32>
    %14 = arith.addf %12, %13 : vector<8x1xf32>
    %15 = tpu.reciprocal %14 : vector<8x1xf32> -> vector<8x1xf32>
    %c0_5 = arith.constant 0 : index
    %c0_6 = arith.constant 0 : index
    %16 = vector.load %arg2[%c0_5, %c0_6] : memref<1x256xf32, #tpu.memory_space<vmem>>, vector<1x256xf32>
    %c0_7 = arith.constant 0 : index
    %c0_8 = arith.constant 0 : index
    %17 = vector.load %arg3[%c0_7, %c0_8] : memref<1x256xf32, #tpu.memory_space<vmem>>, vector<1x256xf32>
    %18 = vector.broadcast %15 : vector<8x1xf32> to vector<8x256xf32>
    %19 = arith.mulf %6, %18 : vector<8x256xf32>
    %20 = vector.broadcast %16 : vector<1x256xf32> to vector<8x256xf32>
    %21 = arith.mulf %20, %19 : vector<8x256xf32>
    %22 = vector.broadcast %17 : vector<1x256xf32> to vector<8x256xf32>
    %23 = arith.addf %21, %22 : vector<8x256xf32>
    %c0_9 = arith.constant 0 : index
    %c0_10 = arith.constant 0 : index
    %24 = vector.load %arg4[%c0_9, %c0_10] : memref<8x256xf32, #tpu.memory_space<vmem>>, vector<8x256xf32>
    tpu.vector_store %arg4[%c0_9, %c0_10], %23 {strides = array<i32>} : memref<8x256xf32, #tpu.memory_space<vmem>>, vector<8x256xf32>,
    return
  }
  func.func @transform_0(%arg0: i32) -> (i32, i32) {
    %c0_i32 = arith.constant 0 : i32
    %c0_i32_0 = arith.constant 0 : i32
    return %arg0, %c0_i32 : i32, i32
  }
  func.func @transform_1(%arg0: i32) -> (i32, i32) {
    %c0_i32 = arith.constant 0 : i32
    %c0_i32_0 = arith.constant 0 : i32
    %c0_i32_1 = arith.constant 0 : i32
    return %c0_i32, %c0_i32_0 : i32, i32
  }
  func.func @transform_2(%arg0: i32) -> (i32, i32) {
    %c0_i32 = arith.constant 0 : i32
    %c0_i32_0 = arith.constant 0 : i32
    %c0_i32_1 = arith.constant 0 : i32
    return %c0_i32, %c0_i32_0 : i32, i32
  }
  func.func @transform_3(%arg0: i32) -> (i32, i32) {
    %c0_i32 = arith.constant 0 : i32
    %c0_i32_0 = arith.constant 0 : i32
    return %arg0, %c0_i32 : i32, i32
  }
}

</mosaic_0001>

<bundles_post_ra>
// kernel: tpu_custom_call.1
= control target key start
LH: loop header
LB: loop body
LE: loop exit
PB: predicated region body
PF: predicated region fallthrough
CT: control target
= control target key end

     0   :  { %8 = vsyncpa [#allocation3], 0  ;;  %s684_s0 = inlined_call_operand.hbm [shape: f32[16,256], index: 0, kind: input, shape index: {}]   ;;  %s685_s1 = inlined_call_operand.vmem [shape: f32[1,256], index: 1, kind: input, shape index: {}]   ;;  %s686_s2 = inlined_call_operand.vmem [shape: f32[1,256], index: 2, kind: input, shape index: {}]   ;;  %s687_s3 = inlined_call_operand.hbm [shape: f32[16,256], index: 3, kind: output, shape index: {}]  }
   0x1   :  { %10 = vsyncpa [#allocation3 + $0x1], 0 }
   0x2   :  { %11 = vsyncpa [#allocation4], 0 }
   0x3   :  { %13 = vsyncpa [#allocation4 + $0x1], 0  ;;  %s513_s12 = smov 0   ;;  %s515_s13 = smov 0  }
   0x4   :  { %s517_s14 = smov 0   ;;  %s519_s15 = smov 0  }
   0x5 LB: > { %s534_s16 = sadd.s32 4294967295, %s489_s15   ;;  %s327_s17 = sadd.s32 4294967294, %s489_s15   ;;  %s489_s15 = sphi %s519_s15, %s702_s15   ;;  %s485_s14 = sphi %s517_s14, %s701_s14   ;;  %s481_s13 = sphi %s515_s13, %s700_s13   ;;  %s477_s12 = sphi %s513_s12, %s699_s12  }
   0x6   : > { %s538_s18 = sadd.s32 1, %s489_s15   ;;  %s26_s19 = sadd.s32 1, %s485_s14 }
   0x7   : > { %s23_s20 = ssub.s32 %s489_s15, %s538_s18  ;;  %p33_p0 = scmp.ne.s32.totalorder %s485_s14, %s481_s13 }
   0x8   : > { %p24_p1 = scmp.eq.s32.totalorder %s23_s20, 0  ;;  %p34_p2 = scmp.eq.s32.totalorder %s489_s15, 0 }
   0x9   : > { %p39_p3 = scmp.ne.s32.totalorder %s481_s13, %s477_s12  ;;  %p40_p4 = scmp.eq.s32.totalorder %s534_s16, 0 }
   0xa   : > { %s550_s21 = scalar_select %p24_p1, %s485_s14, %s26_s19  }
   0xb   : > { %p552_p5 = por %p34_p2, %p33_p0  ;;  %p556_p6 = por %p40_p4, %p39_p3 }
   0xc   : > { %p105_p7 = scmp.eq.s32.totalorder %s534_s16, 1  ;;  %p111_p8 = scmp.eq.s32.totalorder %s327_s17, 1 }
   0xd   : > { %p355_p10 = scmp.lt.s32.totalorder %s489_s15, 2  ;;  %s137_s26 = sand.u32 1, %s485_s14  }
   0xe   : > { %p563_p11 = por %p105_p7, %p33_p0  ;;  %p567_p12 = por %p111_p8, %p39_p3 }
   0xf   : > { %s341_s27 = sshll.u32 %s489_s15, 8  ;;  %s330_s28 = sshll.u32 %s137_s26, 4 }
  0x10   : > { %s691_s24 = scalar_select %p563_p11, 1, 0 }
  0x11   : > { %s692_s25 = scalar_select %p567_p12, 1, 0 }
  0x12   : > { %s576_s4 = scalar_lea.hbm %s684_s0, %s341_s27  ;;  %s141_s5 = scalar_lea.vmem [#allocation2], %s330_s28 }
  0x13   : > { %s149_s6 = sshll.u32 %s141_s5, 4  ;;  %p580_p13 = pnand %p355_p10, %p552_p5  ;;  %s584_s6 = int_to_ptr.vmem [resolvable:$true] %s149_s6 }
  0x14   : > { %s138_s8 = scalar_lea.sflag [#allocation3], %s137_s26  ;;  %s393_s9 = scalar_lea.hbm %s576_s4, 256 }
  0x15   : > { %p394_p2 = scmp.ne.s32.totalorder %s576_s4, %s393_s9  ;;  %p395_p3 = pneg %p580_p13 }
  0x16   : > { %s398_s17 = scalar_lea.hbm %s684_s0, 512  ;;  %p399_p5 = scmp.lt.u32.totalorder %s576_s4, %s684_s0 }
  0x17   : > { %p396_p4 = pnand %p395_p3, %p394_p2  ;;  %p400_p8 = scmp.lt.u32.totalorder %s398_s17, %s393_s9 }
  0x18   : > { %p402_p9 = scmp.lt.u32.totalorder %s393_s9, %s576_s4 }
  0x19   : > { %p397_p7 = pneg %p396_p4  ;;  %p401_p10 = por %p400_p8, %p399_p5 }
  0x1b   : > { %p403_p0 = por %p402_p9, %p401_p10 }
  0x1d   : > { %p404_p1 = pnand %p403_p0, %p397_p7 }
  0x1f   : > { %407 = shalt.err (!%p404_p1)
}
  0x20   : > { %s408_s22 = scalar_lea.vmem %s584_s6, 256  ;;  %s491_s26 = smov [#allocation2]  }
  0x21   : > { %p409_p2 = scmp.ne.s32.totalorder %s584_s6, %s408_s22  ;;  %s413_s27 = sshll.u32 %s491_s26, 4  ;;  %s414_s27 = int_to_ptr.vmem [resolvable:$false] %s413_s27 }
  0x22   : > { %s415_s28 = scalar_lea.vmem %s414_s27, 512  ;;  %p416_p11 = scmp.lt.s32.totalorder %s584_s6, %s414_s27 }
  0x23   : > { %p411_p4 = pnand %p409_p2, %p395_p3  ;;  %p417_p5 = scmp.lt.s32.totalorder %s415_s28, %s408_s22 }
  0x25   : > { %p412_p12 = pneg %p411_p4  ;;  %p418_p8 = por %p417_p5, %p416_p11 }
  0x27   : > { %p419_p9 = pnand %p418_p8, %p412_p12 }
  0x29   : > { %422 = shalt.err (!%p419_p9)
}
  0x2a   : > { %350 = dma.hbm_to_vmem [thread:$0]  (!%p580_p13), %s576_s4, 256, %s584_s6, %s138_s8  }
  0x2b   : > { %p694_p0 = scmp.lt.s32.totalorder %s489_s15, 3  ;;  %p695_p1 = scmp.ge.s32.totalorder %s489_s15, 1 }
  0x2d   : > { %p155_p3 = pnand %p695_p1, %p694_p0 }
  0x2e   : > { %s618_s29 = sand.u32 (!%p155_p3), 1, %s481_s13  }
  0x2f   : > { %158 = sbr.rel (%p155_p3) target bundleno = 400 (0x190), region = 32  ;;  %s334_s30 = sshll.u32 (!%p155_p3), %s618_s29, 4 }
  0x30   : > { %s161_s5 = scalar_lea.sflag (!%p155_p3), [#allocation3], %s618_s29  ;;  %s164_s7 = scalar_lea.vmem (!%p155_p3), [#allocation2], %s334_s30 }
  0x36   : > { %468 = dma.done.wait (%p556_p6), %s161_s5, 256  }
  0x37   : > { %470 = vsyncadd (%p556_p6), %s161_s5, 4294967040  ;;  %v187_v0 = vld [vmem:[%s164_s7] sm:$0xff]  ;;  %v188_v1 = vld [vmem:[%s164_s7 + $0x8] sm:$0xff]  ;;  %v215_v17 = vlaneseq  ;;  %s342_s9 = sshll.u32 %s534_s16, 8  ;;  %s186_s10 = scalar_lea.vmem [#allocation5], %s334_s30 }
  0x38   : > { %v189_v2 = vadd.f32 %v188_v1, %v187_v0  ;;  %v210_v22 = vld [vmem:[%s685_s1] sm:$0x3]  ;;  %s257_s11 = sshll.u32 %s186_s10, 4  ;;  %s640_s20 = scalar_lea.hbm %s687_s3, %s342_s9  ;;  %s642_s11 = int_to_ptr.vmem [resolvable:$true] %s257_s11 }
  0x39   : > { %v216_v19 = vshrl.u32 %v215_v17, 7  ;;  %v211_v23 = vld [vmem:[%s686_s2] sm:$0x3]  ;;  %s243_s16 = scalar_lea.sflag [#allocation4], %s618_s29  ;;  %s423_s22 = scalar_lea.vmem %s642_s11, 256 }
  0x3a   : > { %190 = vadd.xlane.f32.xlu0 %v189_v2  ;;  %p424_p6 = scmp.ne.s32.totalorder %s642_s11, %s423_s22  ;;  %p696_p11 = scmp.ne.s32.totalorder %s691_s24, 0 }
  0x3b   : > { %v217_v20 = vsub.s32 0, %v216_v19  ;;  %v221_v21 = vsub.s32 1, %v216_v19  ;;  %s492_s26 = smov [#allocation5]  }
  0x3c   : > { %p425_p12 = pnand %p424_p6, %p696_p11  ;;  %s427_s27 = sshll.u32 %s492_s26, 4  ;;  %s428_s27 = int_to_ptr.vmem [resolvable:$false] %s427_s27 }
  0x3d   : > { %v218_v24 = vrot.slane %v210_v22, %v217_v20  ;;  %v222_v25 = vrot.slane %v210_v22, %v221_v21  ;;  %v231_v29 = vrot.slane %v211_v23, %v217_v20  ;;  %v235_v30 = vrot.slane %v211_v23, %v221_v21  ;;  %s429_s28 = scalar_lea.vmem %s428_s27, 512  ;;  %p430_p7 = scmp.lt.s32.totalorder %s642_s11, %s428_s27 }
  0x3e   : > { %p426_p13 = pneg %p425_p12  ;;  %p431_p10 = scmp.lt.s32.totalorder %s429_s28, %s423_s22 }
  0x40   : > { %p432_p2 = por %p431_p10, %p430_p7 }
  0x42   : > { %p433_p4 = pnand %p432_p2, %p426_p13 }
  0xc7   : > { %v191_v3 = vpop.xlane.xlu0 %190 }
  0xc8   : > { %v192_v4 = vmul.f32 0.00390625, %v191_v3 }
  0xca   : > { %v193_v5 = vsub.f32 %v187_v0, %v192_v4  ;;  %v194_v6 = vsub.f32 %v188_v1, %v192_v4 }
  0xcc   : > { %v195_v7 = vmul.f32 %v193_v5, %v193_v5  ;;  %v196_v8 = vmul.f32 %v194_v6, %v194_v6 }
  0xce   : > { %v197_v9 = vadd.f32 %v196_v8, %v195_v7 }
  0xd0   : > { %198 = vadd.xlane.f32.xlu0 %v197_v9 }
 0x15d   : > { %v199_v10 = vpop.xlane.xlu0 %198 }
 0x15e   : > { %v200_v11 = vmul.f32 0.003921569, %v199_v10 }
 0x160   : > { %389 = vrsqrt.f32 %v200_v11  ;;  %vm203_vm0 = vcmp.eq.f32.partialorder %v200_v11, inf  ;;  %v206_v14 = vand.u32 2147483648, %v200_v11  ;;  %vm205_vm1 = vcmp.eq.f32.partialorder %v200_v11, 0.0 }
 0x16a   : > { %v390_v12 = vpop.eup %389 }
 0x16b   : > { %v202_v13 = vmul.f32 %v390_v12, %v200_v11 }
 0x16d   : > { %v204_v15 = vsel %vm203_vm0, %v200_v11, %v202_v13 }
 0x16e   : > { %v207_v16 = vsel %vm205_vm1, %v206_v14, %v204_v15 }
 0x16f   : > { %v208_v18 = vadd.f32 1e-06, %v207_v16 }
 0x171   : > { %391 = vrcp.f32 %v208_v18 }
 0x17b   : > { %v392_v26 = vpop.eup %391 }
 0x17c   : > { %v212_v27 = vmul.f32 %v392_v26, %v193_v5  ;;  %v213_v28 = vmul.f32 %v392_v26, %v194_v6 }
 0x17e   : > { %v225_v31 = vmul.f32 %v218_v24, %v212_v27  ;;  %v226_v32 = vmul.f32 %v222_v25, %v213_v28 }
 0x180   : > { %v238_v33 = vadd.f32 %v231_v29, %v225_v31  ;;  %v239_v34 = vadd.f32 %v235_v30, %v226_v32 }
 0x182   : > { %240 = vst [vmem:[%s186_s10] sm:$0xff] %v238_v33  ;;  %241 = vst [vmem:[%s186_s10 + $0x8] sm:$0xff] %v239_v34 }
 0x183   : > { %436 = shalt.err (!%p433_p4)
}
 0x184   : > { %s437_s29 = scalar_lea.hbm %s640_s20, 256  ;;  %s441_s7 = scalar_lea.hbm %s687_s3, 512 }
 0x185   : > { %p438_p5 = scmp.ne.s32.totalorder %s640_s20, %s437_s29  ;;  %p442_p0 = scmp.lt.u32.totalorder %s640_s20, %s687_s3 }
 0x186   : > { %p443_p1 = scmp.lt.u32.totalorder %s441_s7, %s437_s29  ;;  %p445_p6 = scmp.lt.u32.totalorder %s437_s29, %s640_s20 }
 0x187   : > { %p439_p8 = pnand %p438_p5, %p696_p11 }
 0x188   : > { %p444_p3 = por %p443_p1, %p442_p0 }
 0x189   : > { %p440_p9 = pneg %p439_p8 }
 0x18a   : > { %p446_p12 = por %p445_p6, %p444_p3 }
 0x18c   : > { %p447_p13 = pnand %p446_p12, %p440_p9 }
 0x18e   : > { %450 = shalt.err (!%p447_p13)
}
 0x18f   : > { %345 = dma.vmem_to_hbm [thread:$0]  (%p696_p11), %s642_s11, 256, %s640_s20, %s243_s16  }
 0x190 PF: > { %s269_s6 = sand.u32 1, %s477_s12   ;;  %p697_p7 = scmp.ne.s32.totalorder %s692_s25, 0 }
 0x191   : > { %p698_p10 = scmp.ge.s32.totalorder %s489_s15, 2  ;;  %s270_s8 = scalar_lea.sflag [#allocation4], %s269_s6 }
 0x193   : > { %p352_p2 = pnand %p698_p10, %p697_p7 }
 0x195   : > { %472 = dma.done.wait (!%p352_p2), %s270_s8, 256  }
 0x196   : > { %474 = vsyncadd (!%p352_p2), %s270_s8, 4294967040  ;;  %p16_p4 = scmp.ge.s32.totalorder %s538_s18, 4   ;;  %s699_s12 = smov %s481_s13 }
 0x197   : > { %s700_s13 = smov %s485_s14  ;;  %s701_s14 = smov %s550_s21 }
 0x198   : > { %s702_s15 = smov %s538_s18  ;;  %18 = sbr.rel (!%p16_p4) target bundleno = 5 (0x5), region = 77 }
 0x19f   :  { %275 = vsyncpa [#allocation3], 1 }
 0x1a0   :  { %277 = vsyncpa [#allocation3 + $0x1], 1 }
 0x1a1   :  { %278 = vsyncpa [#allocation4], 1 }
 0x1a2   :  { %280 = vsyncpa [#allocation4 + $0x1], 1 }

</bundles_post_ra>
